<compile_context>
chip_gen: v7x
topology: tpu7x:2x2x1
jax: 0.10.0
libtpu: 0.0.40
codegen_flags: <defaults>
</compile_context>

<pallas_src>
import functools

import jax
import jax.numpy as jnp
from jax import lax
from jax.experimental import pallas as pl
from jax.experimental.pallas import tpu as pltpu

KSIZE = 3  # kernel_size=3, stride=1, padding=1 (as in the PyTorch module)


def _pconv_kernel(x_ref, w_ref, scale_ref, shift_ref, o_ref,
                  *, H, W, HWp, Cp, Nb):
    # x_ref:     (Nb, C, HWp)   lane-dense images (part1 = channel rows [:Cp])
    # w_ref:     (9, Cp, Cp)    bf16 conv weight, one (out,in) slice per tap
    # scale_ref: (C, 1) f32     BN scale
    # shift_ref: (C, 1) f32     BN shift
    # o_ref:     (Nb, C, HWp)
    HW = H * W

    # In-kernel halo masks (the conv's zero padding) from a single iota.
    pos = lax.broadcasted_iota(jnp.int32, (1, HWp), 1)
    if (W & (W - 1)) == 0:
        col = pos & (W - 1)            # power-of-two width: cheap bitwise AND
    else:
        col = jnp.remainder(pos, W)    # generic width
    top_ok = pos >= W                  # dy = -1 valid
    bot_ok = pos < (HW - W)            # dy = +1 valid (also masks pad lanes)
    left_ok = col >= 1                 # dx = -1 valid
    right_ok = col < (W - 1)           # dx = +1 valid

    for n in range(Nb):
        part1 = x_ref[n, :Cp, :].astype(jnp.float32)       # (Cp, HWp)

        # 9 accumulating MXU matmuls; each tap is a lane roll (XLU) of part1,
        # halo-masked (VPU), cast to bf16 only as the MXU operand.
        acc = None
        k = 0
        for dy in (-1, 0, 1):
            for dx in (-1, 0, 1):
                m = dy * W + dx
                if m == 0:
                    shifted = part1
                else:
                    # shifted[c, p] == part1[c, (p + m) mod HWp]; masks zero
                    # every position whose true neighbor is outside the image.
                    shifted = pltpu.roll(part1, shift=(-m) % HWp, axis=1)
                mask = None
                if dy == -1:
                    mask = top_ok
                elif dy == 1:
                    mask = bot_ok
                if dx == -1:
                    mask = left_ok if mask is None else (mask & left_ok)
                elif dx == 1:
                    mask = right_ok if mask is None else (mask & right_ok)
                tap = shifted if mask is None else jnp.where(mask, shifted, 0.0)
                contrib = jnp.dot(w_ref[k], tap.astype(jnp.bfloat16),
                                  preferred_element_type=jnp.float32)
                acc = contrib if acc is None else acc + contrib
                k += 1

        # Conv half: BN scale/shift on the f32 accumulator, then ReLU.
        y1 = acc * scale_ref[:Cp, :] + shift_ref[:Cp, :]
        o_ref[n, :Cp, :] = jnp.maximum(y1, 0.0).astype(o_ref.dtype)

        # Untouched half: BN + ReLU only, stored directly (no concat copy).
        part2 = x_ref[n, Cp:, :].astype(jnp.float32)
        y2 = part2 * scale_ref[Cp:, :] + shift_ref[Cp:, :]
        o_ref[n, Cp:, :] = jnp.maximum(y2, 0.0).astype(o_ref.dtype)


def pconv_forward(x, conv_w, gamma, beta, running_mean, running_var, eps=1e-5):
    """x: (N, C, H, W). Returns (N, C, H, W) in x.dtype."""
    N, C, H, W = x.shape
    Cp = conv_w.shape[0]
    HW = H * W
    HWp = ((HW + 127) // 128) * 128        # lane-dense: pad spatial to 128k

    # Fold BN running stats (inference mode) into per-channel scale/shift.
    inv = gamma * lax.rsqrt(running_var + eps)                  # (C,)
    shift = beta - running_mean * inv                           # (C,)
    scale_col = inv.reshape(C, 1).astype(jnp.float32)
    shift_col = shift.reshape(C, 1).astype(jnp.float32)

    # Weight as 9 per-tap (out,in) slices, ordered (dy,dx) row-major to match
    # the kernel loop; stored bf16 (MXU operand dtype), BN applied post-acc.
    w_taps = jnp.transpose(conv_w, (2, 3, 0, 1)).reshape(KSIZE * KSIZE, Cp, Cp)
    w_taps = w_taps.astype(jnp.bfloat16)

    x2d = x.reshape(N, C, HW)
    if HWp != HW:
        x2d = jnp.pad(x2d, ((0, 0), (0, 0), (0, HWp - HW)))

    # Images per grid step: amortize per-step overhead on tiny images, but
    # keep per-step blocks small (fits default scoped VMEM on v5e/v6e/v7x)
    # and keep >=2 grid steps when N allows so v7x uses both TensorCores.
    itemsize = jnp.dtype(x.dtype).itemsize
    per_image_bytes = 2 * C * HWp * itemsize          # in + out block slice
    budget = 4 * 1024 * 1024
    Nb = int(max(1, min(N, budget // max(per_image_bytes, 1), 8)))
    if N >= 2:
        Nb = max(1, min(Nb, N // 2))
    while N % Nb:
        Nb -= 1
    grid = (N // Nb,)

    kernel = functools.partial(_pconv_kernel, H=H, W=W, HWp=HWp, Cp=Cp, Nb=Nb)
    out2d = pl.pallas_call(
        kernel,
        out_shape=jax.ShapeDtypeStruct((N, C, HWp), x.dtype),
        grid_spec=pltpu.PrefetchScalarGridSpec(
            num_scalar_prefetch=0,
            grid=grid,
            in_specs=[
                pl.BlockSpec((Nb, C, HWp), lambda n: (n, 0, 0)),
                pl.BlockSpec((KSIZE * KSIZE, Cp, Cp), lambda n: (0, 0, 0)),
                pl.BlockSpec((C, 1), lambda n: (0, 0)),
                pl.BlockSpec((C, 1), lambda n: (0, 0)),
            ],
            out_specs=pl.BlockSpec((Nb, C, HWp), lambda n: (n, 0, 0)),
        ),
        compiler_params=pltpu.CompilerParams(
            dimension_semantics=("parallel",)),
    )(x2d, w_taps, scale_col, shift_col)

    if HWp != HW:
        out2d = out2d[:, :, :HW]
    return out2d.reshape(N, C, H, W)


def pconv_reference(x, conv_w, gamma, beta, running_mean, running_var, eps=1e-5):
    """Pure-JAX reference (same semantics as the PyTorch module, eval mode)."""
    Cp = conv_w.shape[0]
    part1, part2 = x[:, :Cp], x[:, Cp:]
    conv = lax.conv_general_dilated(
        part1, conv_w, window_strides=(1, 1), padding=((1, 1), (1, 1)),
        dimension_numbers=("NCHW", "OIHW", "NCHW"))
    y = jnp.concatenate([conv, part2], axis=1)
    inv = gamma / jnp.sqrt(running_var + eps)
    y = y * inv[None, :, None, None] + (beta - running_mean * inv)[None, :, None, None]
    return jnp.maximum(y, 0.0)


if __name__ == "__main__":
    # Module config: in_channels=4, out_channels=4, kernel_size=3, stride=1,
    # padding=1, ratio=0.5 -> part_channels=2.
    N, C, H, W = 2, 4, 16, 16
    ratio = 0.5
    Cp = int(C * ratio)

    key = jax.random.PRNGKey(0)
    kx, kw, kg, kb, km, kv = jax.random.split(key, 6)

    x = jax.random.normal(kx, (N, C, H, W), dtype=jnp.float32)
    conv_w = jax.random.normal(kw, (Cp, Cp, KSIZE, KSIZE), dtype=jnp.float32) * 0.2
    gamma = 1.0 + 0.1 * jax.random.normal(kg, (C,), dtype=jnp.float32)
    beta = 0.1 * jax.random.normal(kb, (C,), dtype=jnp.float32)
    running_mean = 0.1 * jax.random.normal(km, (C,), dtype=jnp.float32)
    running_var = jnp.abs(jax.random.normal(kv, (C,), dtype=jnp.float32)) + 0.5

    out = pconv_forward(x, conv_w, gamma, beta, running_mean, running_var)
    out = jax.block_until_ready(out)

    ref = pconv_reference(x, conv_w, gamma, beta, running_mean, running_var)
    assert out.shape == (N, C, H, W)
    err = float(jnp.max(jnp.abs(out - ref)))
    # bf16 MXU operands with f32 accumulation: tolerance relaxed vs full-f32.
    assert err < 5e-2, f"max abs err vs reference: {err}"

    print("KERNEL_OK")
</pallas_src>

<mosaic_0001>
module attributes {stable_mosaic.version = 11 : i64} {
  func.func @_pconv_kernel(%arg0: i32, %arg1: memref<1x4x256xf32, #tpu.memory_space<vmem>>, %arg2: memref<9x2x2xbf16, #tpu.memory_space<vmem>>, %arg3: memref<4x1xf32, #tpu.memory_space<vmem>>, %arg4: memref<4x1xf32, #tpu.memory_space<vmem>>, %arg5: memref<1x4x256xf32, #tpu.memory_space<vmem>>) attributes {dimension_semantics = [#tpu.dimension_semantics<parallel>], iteration_bounds = array<i64: 2>, scalar_prefetch = 0 : i64, scratch_operands = 0 : i64, tpu.core_type = #tpu.core_type<tc>, window_params = [{transform_indices = @transform_0, window_bounds = array<i64: 1, 4, 256>}, {pipeline_mode = #tpu.pipeline_mode<synchronous>, transform_indices = @transform_1, window_bounds = array<i64: 9, 2, 2>}, {pipeline_mode = #tpu.pipeline_mode<synchronous>, transform_indices = @transform_2, window_bounds = array<i64: 4, 1>}, {pipeline_mode = #tpu.pipeline_mode<synchronous>, transform_indices = @transform_3, window_bounds = array<i64: 4, 1>}, {transform_indices = @transform_4, window_bounds = array<i64: 1, 4, 256>}]} {
    %0 = tpu.iota {dimensions = array<i32: 1>} : vector<1x256xi32>
    %c15_i32 = arith.constant 15 : i32
    %1 = vector.broadcast %c15_i32 : i32 to vector<1x256xi32>
    %2 = arith.andi %0, %1 : vector<1x256xi32>
    %c16_i32 = arith.constant 16 : i32
    %3 = vector.broadcast %c16_i32 : i32 to vector<1x256xi32>
    %4 = arith.cmpi sge, %0, %3 : vector<1x256xi32>
    %c240_i32 = arith.constant 240 : i32
    %5 = vector.broadcast %c240_i32 : i32 to vector<1x256xi32>
    %6 = arith.cmpi slt, %0, %5 : vector<1x256xi32>
    %c1_i32 = arith.constant 1 : i32
    %7 = vector.broadcast %c1_i32 : i32 to vector<1x256xi32>
    %8 = arith.cmpi sge, %2, %7 : vector<1x256xi32>
    %c15_i32_0 = arith.constant 15 : i32
    %9 = vector.broadcast %c15_i32_0 : i32 to vector<1x256xi32>
    %10 = arith.cmpi slt, %2, %9 : vector<1x256xi32>
    %c0 = arith.constant 0 : index
    %c0_1 = arith.constant 0 : index
    %c0_2 = arith.constant 0 : index
    %11 = vector.load %arg1[%c0, %c0_1, %c0_2] : memref<1x4x256xf32, #tpu.memory_space<vmem>>, vector<1x2x256xf32>
    %12 = vector.shape_cast %11 : vector<1x2x256xf32> to vector<2x256xf32>
    %c17_i32 = arith.constant 17 : i32
    %13 = tpu.dynamic_rotate %12 by %c17_i32 dim 1 : vector<2x256xf32>, i32 -> vector<2x256xf32>
    %14 = arith.andi %4, %8 : vector<1x256xi1>
    %cst = arith.constant 0.000000e+00 : f32
    %15 = vector.shape_cast %14 : vector<1x256xi1> to vector<1x256xi1>
    %16 = vector.broadcast %15 : vector<1x256xi1> to vector<2x256xi1>
    %17 = vector.broadcast %cst : f32 to vector<2x256xf32>
    %18 = arith.select %16, %13, %17 : vector<2x256xi1>, vector<2x256xf32>
    %c0_3 = arith.constant 0 : index
    %c0_4 = arith.constant 0 : index
    %c0_5 = arith.constant 0 : index
    %19 = vector.load %arg2[%c0_3, %c0_4, %c0_5] : memref<9x2x2xbf16, #tpu.memory_space<vmem>>, vector<1x2x2xbf16>
    %20 = vector.shape_cast %19 : vector<1x2x2xbf16> to vector<2x2xbf16>
    %21 = arith.truncf %18 : vector<2x256xf32> to vector<2x256xbf16>
    %cst_6 = arith.constant dense<0.000000e+00> : vector<2x256xf32>
    %22 = tpu.matmul %20, %21, %cst_6 {dimension_numbers = #tpu.dot_dimension_numbers<[1], [0], [0], [1], [0, 0, 1, 1], [], []>} : vector<2x2xbf16>, vector<2x256xbf16>, vector<2x256xf32> -> vector<2x256xf32>
    %c16_i32_7 = arith.constant 16 : i32
    %23 = tpu.dynamic_rotate %12 by %c16_i32_7 dim 1 : vector<2x256xf32>, i32 -> vector<2x256xf32>
    %cst_8 = arith.constant 0.000000e+00 : f32
    %24 = vector.shape_cast %4 : vector<1x256xi1> to vector<1x256xi1>
    %25 = vector.broadcast %24 : vector<1x256xi1> to vector<2x256xi1>
    %26 = vector.broadcast %cst_8 : f32 to vector<2x256xf32>
    %27 = arith.select %25, %23, %26 : vector<2x256xi1>, vector<2x256xf32>
    %c1 = arith.constant 1 : index
    %c0_9 = arith.constant 0 : index
    %c0_10 = arith.constant 0 : index
    %28 = vector.load %arg2[%c1, %c0_9, %c0_10] : memref<9x2x2xbf16, #tpu.memory_space<vmem>>, vector<1x2x2xbf16>
    %29 = vector.shape_cast %28 : vector<1x2x2xbf16> to vector<2x2xbf16>
    %30 = arith.truncf %27 : vector<2x256xf32> to vector<2x256xbf16>
    %cst_11 = arith.constant dense<0.000000e+00> : vector<2x256xf32>
    %31 = tpu.matmul %29, %30, %cst_11 {dimension_numbers = #tpu.dot_dimension_numbers<[1], [0], [0], [1], [0, 0, 1, 1], [], []>} : vector<2x2xbf16>, vector<2x256xbf16>, vector<2x256xf32> -> vector<2x256xf32>
    %32 = arith.addf %22, %31 : vector<2x256xf32>
    %c15_i32_12 = arith.constant 15 : i32
    %33 = tpu.dynamic_rotate %12 by %c15_i32_12 dim 1 : vector<2x256xf32>, i32 -> vector<2x256xf32>
    %34 = arith.andi %4, %10 : vector<1x256xi1>
    %cst_13 = arith.constant 0.000000e+00 : f32
    %35 = vector.shape_cast %34 : vector<1x256xi1> to vector<1x256xi1>
    %36 = vector.broadcast %35 : vector<1x256xi1> to vector<2x256xi1>
    %37 = vector.broadcast %cst_13 : f32 to vector<2x256xf32>
    %38 = arith.select %36, %33, %37 : vector<2x256xi1>, vector<2x256xf32>
    %c2 = arith.constant 2 : index
    %c0_14 = arith.constant 0 : index
    %c0_15 = arith.constant 0 : index
    %39 = vector.load %arg2[%c2, %c0_14, %c0_15] : memref<9x2x2xbf16, #tpu.memory_space<vmem>>, vector<1x2x2xbf16>
    %40 = vector.shape_cast %39 : vector<1x2x2xbf16> to vector<2x2xbf16>
    %41 = arith.truncf %38 : vector<2x256xf32> to vector<2x256xbf16>
    %cst_16 = arith.constant dense<0.000000e+00> : vector<2x256xf32>
    %42 = tpu.matmul %40, %41, %cst_16 {dimension_numbers = #tpu.dot_dimension_numbers<[1], [0], [0], [1], [0, 0, 1, 1], [], []>} : vector<2x2xbf16>, vector<2x256xbf16>, vector<2x256xf32> -> vector<2x256xf32>
    %43 = arith.addf %32, %42 : vector<2x256xf32>
    %c1_i32_17 = arith.constant 1 : i32
    %44 = tpu.dynamic_rotate %12 by %c1_i32_17 dim 1 : vector<2x256xf32>, i32 -> vector<2x256xf32>
    %cst_18 = arith.constant 0.000000e+00 : f32
    %45 = vector.shape_cast %8 : vector<1x256xi1> to vector<1x256xi1>
    %46 = vector.broadcast %45 : vector<1x256xi1> to vector<2x256xi1>
    %47 = vector.broadcast %cst_18 : f32 to vector<2x256xf32>
    %48 = arith.select %46, %44, %47 : vector<2x256xi1>, vector<2x256xf32>
    %c3 = arith.constant 3 : index
    %c0_19 = arith.constant 0 : index
    %c0_20 = arith.constant 0 : index
    %49 = vector.load %arg2[%c3, %c0_19, %c0_20] : memref<9x2x2xbf16, #tpu.memory_space<vmem>>, vector<1x2x2xbf16>
    %50 = vector.shape_cast %49 : vector<1x2x2xbf16> to vector<2x2xbf16>
    %51 = arith.truncf %48 : vector<2x256xf32> to vector<2x256xbf16>
    %cst_21 = arith.constant dense<0.000000e+00> : vector<2x256xf32>
    %52 = tpu.matmul %50, %51, %cst_21 {dimension_numbers = #tpu.dot_dimension_numbers<[1], [0], [0], [1], [0, 0, 1, 1], [], []>} : vector<2x2xbf16>, vector<2x256xbf16>, vector<2x256xf32> -> vector<2x256xf32>
    %53 = arith.addf %43, %52 : vector<2x256xf32>
    %c4 = arith.constant 4 : index
    %c0_22 = arith.constant 0 : index
    %c0_23 = arith.constant 0 : index
    %54 = vector.load %arg2[%c4, %c0_22, %c0_23] : memref<9x2x2xbf16, #tpu.memory_space<vmem>>, vector<1x2x2xbf16>
    %55 = vector.shape_cast %54 : vector<1x2x2xbf16> to vector<2x2xbf16>
    %56 = arith.truncf %12 : vector<2x256xf32> to vector<2x256xbf16>
    %cst_24 = arith.constant dense<0.000000e+00> : vector<2x256xf32>
    %57 = tpu.matmul %55, %56, %cst_24 {dimension_numbers = #tpu.dot_dimension_numbers<[1], [0], [0], [1], [0, 0, 1, 1], [], []>} : vector<2x2xbf16>, vector<2x256xbf16>, vector<2x256xf32> -> vector<2x256xf32>
    %58 = arith.addf %53, %57 : vector<2x256xf32>
    %c255_i32 = arith.constant 255 : i32
    %59 = tpu.dynamic_rotate %12 by %c255_i32 dim 1 : vector<2x256xf32>, i32 -> vector<2x256xf32>
    %cst_25 = arith.constant 0.000000e+00 : f32
    %60 = vector.shape_cast %10 : vector<1x256xi1> to vector<1x256xi1>
    %61 = vector.broadcast %60 : vector<1x256xi1> to vector<2x256xi1>
    %62 = vector.broadcast %cst_25 : f32 to vector<2x256xf32>
    %63 = arith.select %61, %59, %62 : vector<2x256xi1>, vector<2x256xf32>
    %c5 = arith.constant 5 : index
    %c0_26 = arith.constant 0 : index
    %c0_27 = arith.constant 0 : index
    %64 = vector.load %arg2[%c5, %c0_26, %c0_27] : memref<9x2x2xbf16, #tpu.memory_space<vmem>>, vector<1x2x2xbf16>
    %65 = vector.shape_cast %64 : vector<1x2x2xbf16> to vector<2x2xbf16>
    %66 = arith.truncf %63 : vector<2x256xf32> to vector<2x256xbf16>
    %cst_28 = arith.constant dense<0.000000e+00> : vector<2x256xf32>
    %67 = tpu.matmul %65, %66, %cst_28 {dimension_numbers = #tpu.dot_dimension_numbers<[1], [0], [0], [1], [0, 0, 1, 1], [], []>} : vector<2x2xbf16>, vector<2x256xbf16>, vector<2x256xf32> -> vector<2x256xf32>
    %68 = arith.addf %58, %67 : vector<2x256xf32>
    %c241_i32 = arith.constant 241 : i32
    %69 = tpu.dynamic_rotate %12 by %c241_i32 dim 1 : vector<2x256xf32>, i32 -> vector<2x256xf32>
    %70 = arith.andi %6, %8 : vector<1x256xi1>
    %cst_29 = arith.constant 0.000000e+00 : f32
    %71 = vector.shape_cast %70 : vector<1x256xi1> to vector<1x256xi1>
    %72 = vector.broadcast %71 : vector<1x256xi1> to vector<2x256xi1>
    %73 = vector.broadcast %cst_29 : f32 to vector<2x256xf32>
    %74 = arith.select %72, %69, %73 : vector<2x256xi1>, vector<2x256xf32>
    %c6 = arith.constant 6 : index
    %c0_30 = arith.constant 0 : index
    %c0_31 = arith.constant 0 : index
    %75 = vector.load %arg2[%c6, %c0_30, %c0_31] : memref<9x2x2xbf16, #tpu.memory_space<vmem>>, vector<1x2x2xbf16>
    %76 = vector.shape_cast %75 : vector<1x2x2xbf16> to vector<2x2xbf16>
    %77 = arith.truncf %74 : vector<2x256xf32> to vector<2x256xbf16>
    %cst_32 = arith.constant dense<0.000000e+00> : vector<2x256xf32>
    %78 = tpu.matmul %76, %77, %cst_32 {dimension_numbers = #tpu.dot_dimension_numbers<[1], [0], [0], [1], [0, 0, 1, 1], [], []>} : vector<2x2xbf16>, vector<2x256xbf16>, vector<2x256xf32> -> vector<2x256xf32>
    %79 = arith.addf %68, %78 : vector<2x256xf32>
    %c240_i32_33 = arith.constant 240 : i32
    %80 = tpu.dynamic_rotate %12 by %c240_i32_33 dim 1 : vector<2x256xf32>, i32 -> vector<2x256xf32>
    %cst_34 = arith.constant 0.000000e+00 : f32
    %81 = vector.shape_cast %6 : vector<1x256xi1> to vector<1x256xi1>
    %82 = vector.broadcast %81 : vector<1x256xi1> to vector<2x256xi1>
    %83 = vector.broadcast %cst_34 : f32 to vector<2x256xf32>
    %84 = arith.select %82, %80, %83 : vector<2x256xi1>, vector<2x256xf32>
    %c7 = arith.constant 7 : index
    %c0_35 = arith.constant 0 : index
    %c0_36 = arith.constant 0 : index
    %85 = vector.load %arg2[%c7, %c0_35, %c0_36] : memref<9x2x2xbf16, #tpu.memory_space<vmem>>, vector<1x2x2xbf16>
    %86 = vector.shape_cast %85 : vector<1x2x2xbf16> to vector<2x2xbf16>
    %87 = arith.truncf %84 : vector<2x256xf32> to vector<2x256xbf16>
    %cst_37 = arith.constant dense<0.000000e+00> : vector<2x256xf32>
    %88 = tpu.matmul %86, %87, %cst_37 {dimension_numbers = #tpu.dot_dimension_numbers<[1], [0], [0], [1], [0, 0, 1, 1], [], []>} : vector<2x2xbf16>, vector<2x256xbf16>, vector<2x256xf32> -> vector<2x256xf32>
    %89 = arith.addf %79, %88 : vector<2x256xf32>
    %c239_i32 = arith.constant 239 : i32
    %90 = tpu.dynamic_rotate %12 by %c239_i32 dim 1 : vector<2x256xf32>, i32 -> vector<2x256xf32>
    %91 = arith.andi %6, %10 : vector<1x256xi1>
    %cst_38 = arith.constant 0.000000e+00 : f32
    %92 = vector.shape_cast %91 : vector<1x256xi1> to vector<1x256xi1>
    %93 = vector.broadcast %92 : vector<1x256xi1> to vector<2x256xi1>
    %94 = vector.broadcast %cst_38 : f32 to vector<2x256xf32>
    %95 = arith.select %93, %90, %94 : vector<2x256xi1>, vector<2x256xf32>
    %c8 = arith.constant 8 : index
    %c0_39 = arith.constant 0 : index
    %c0_40 = arith.constant 0 : index
    %96 = vector.load %arg2[%c8, %c0_39, %c0_40] : memref<9x2x2xbf16, #tpu.memory_space<vmem>>, vector<1x2x2xbf16>
    %97 = vector.shape_cast %96 : vector<1x2x2xbf16> to vector<2x2xbf16>
    %98 = arith.truncf %95 : vector<2x256xf32> to vector<2x256xbf16>
    %cst_41 = arith.constant dense<0.000000e+00> : vector<2x256xf32>
    %99 = tpu.matmul %97, %98, %cst_41 {dimension_numbers = #tpu.dot_dimension_numbers<[1], [0], [0], [1], [0, 0, 1, 1], [], []>} : vector<2x2xbf16>, vector<2x256xbf16>, vector<2x256xf32> -> vector<2x256xf32>
    %100 = arith.addf %89, %99 : vector<2x256xf32>
    %c0_42 = arith.constant 0 : index
    %c0_43 = arith.constant 0 : index
    %101 = vector.load %arg3[%c0_42, %c0_43] : memref<4x1xf32, #tpu.memory_space<vmem>>, vector<2x1xf32>
    %102 = vector.broadcast %101 : vector<2x1xf32> to vector<2x256xf32>
    %103 = arith.mulf %100, %102 : vector<2x256xf32>
    %c0_44 = arith.constant 0 : index
    %c0_45 = arith.constant 0 : index
    %104 = vector.load %arg4[%c0_44, %c0_45] : memref<4x1xf32, #tpu.memory_space<vmem>>, vector<2x1xf32>
    %105 = vector.broadcast %104 : vector<2x1xf32> to vector<2x256xf32>
    %106 = arith.addf %103, %105 : vector<2x256xf32>
    %cst_46 = arith.constant 0.000000e+00 : f32
    %107 = vector.broadcast %cst_46 : f32 to vector<2x256xf32>
    %108 = arith.maximumf %106, %107 : vector<2x256xf32>
    %c0_47 = arith.constant 0 : index
    %c0_48 = arith.constant 0 : index
    %c0_49 = arith.constant 0 : index
    %109 = vector.load %arg5[%c0_47, %c0_48, %c0_49] : memref<1x4x256xf32, #tpu.memory_space<vmem>>, vector<1x2x256xf32>
    %110 = vector.shape_cast %109 : vector<1x2x256xf32> to vector<2x256xf32>
    %111 = vector.shape_cast %108 : vector<2x256xf32> to vector<1x2x256xf32>
    tpu.vector_store %arg5[%c0_47, %c0_48, %c0_49], %111 {strides = array<i32>} : memref<1x4x256xf32, #tpu.memory_space<vmem>>, vector<1x2x256xf32>,
    %c0_50 = arith.constant 0 : index
    %c2_51 = arith.constant 2 : index
    %c0_52 = arith.constant 0 : index
    %112 = vector.load %arg1[%c0_50, %c2_51, %c0_52] : memref<1x4x256xf32, #tpu.memory_space<vmem>>, vector<1x2x256xf32>
    %113 = vector.shape_cast %112 : vector<1x2x256xf32> to vector<2x256xf32>
    %c2_53 = arith.constant 2 : index
    %c0_54 = arith.constant 0 : index
    %114 = vector.load %arg3[%c2_53, %c0_54] : memref<4x1xf32, #tpu.memory_space<vmem>>, vector<2x1xf32>
    %115 = vector.broadcast %114 : vector<2x1xf32> to vector<2x256xf32>
    %116 = arith.mulf %113, %115 : vector<2x256xf32>
    %c2_55 = arith.constant 2 : index
    %c0_56 = arith.constant 0 : index
    %117 = vector.load %arg4[%c2_55, %c0_56] : memref<4x1xf32, #tpu.memory_space<vmem>>, vector<2x1xf32>
    %118 = vector.broadcast %117 : vector<2x1xf32> to vector<2x256xf32>
    %119 = arith.addf %116, %118 : vector<2x256xf32>
    %cst_57 = arith.constant 0.000000e+00 : f32
    %120 = vector.broadcast %cst_57 : f32 to vector<2x256xf32>
    %121 = arith.maximumf %119, %120 : vector<2x256xf32>
    %c0_58 = arith.constant 0 : index
    %c2_59 = arith.constant 2 : index
    %c0_60 = arith.constant 0 : index
    %122 = vector.load %arg5[%c0_58, %c2_59, %c0_60] : memref<1x4x256xf32, #tpu.memory_space<vmem>>, vector<1x2x256xf32>
    %123 = vector.shape_cast %122 : vector<1x2x256xf32> to vector<2x256xf32>
    %124 = vector.shape_cast %121 : vector<2x256xf32> to vector<1x2x256xf32>
    tpu.vector_store %arg5[%c0_58, %c2_59, %c0_60], %124 {strides = array<i32>} : memref<1x4x256xf32, #tpu.memory_space<vmem>>, vector<1x2x256xf32>,
    return
  }
  func.func @transform_0(%arg0: i32) -> (i32, i32, i32) {
    %c0_i32 = arith.constant 0 : i32
    %c0_i32_0 = arith.constant 0 : i32
    %c0_i32_1 = arith.constant 0 : i32
    return %arg0, %c0_i32, %c0_i32_0 : i32, i32, i32
  }
  func.func @transform_1(%arg0: i32) -> (i32, i32, i32) {
    %c0_i32 = arith.constant 0 : i32
    %c0_i32_0 = arith.constant 0 : i32
    %c0_i32_1 = arith.constant 0 : i32
    %c0_i32_2 = arith.constant 0 : i32
    return %c0_i32, %c0_i32_0, %c0_i32_1 : i32, i32, i32
  }
  func.func @transform_2(%arg0: i32) -> (i32, i32) {
    %c0_i32 = arith.constant 0 : i32
    %c0_i32_0 = arith.constant 0 : i32
    %c0_i32_1 = arith.constant 0 : i32
    return %c0_i32, %c0_i32_0 : i32, i32
  }
  func.func @transform_3(%arg0: i32) -> (i32, i32) {
    %c0_i32 = arith.constant 0 : i32
    %c0_i32_0 = arith.constant 0 : i32
    %c0_i32_1 = arith.constant 0 : i32
    return %c0_i32, %c0_i32_0 : i32, i32
  }
  func.func @transform_4(%arg0: i32) -> (i32, i32, i32) {
    %c0_i32 = arith.constant 0 : i32
    %c0_i32_0 = arith.constant 0 : i32
    %c0_i32_1 = arith.constant 0 : i32
    return %arg0, %c0_i32, %c0_i32_0 : i32, i32, i32
  }
}

</mosaic_0001>

<bundles_post_ra>
// kernel: tpu_custom_call.1
= control target key start
LH: loop header
LB: loop body
LE: loop exit
PB: predicated region body
PF: predicated region fallthrough
CT: control target
= control target key end

     0   :  { %9 = vsyncpa [#allocation3], 0  ;;  %s1501_s0 = inlined_call_operand.vmem [shape: f32[2,4,256], index: 0, kind: input, shape index: {}]   ;;  %s1502_s1 = inlined_call_operand.vmem [shape: bf16[9,2,2], index: 1, kind: input, shape index: {}]   ;;  %s1503_s2 = inlined_call_operand.vmem [shape: f32[4,1], index: 2, kind: input, shape index: {}]   ;;  %s1504_s3 = inlined_call_operand.vmem [shape: f32[4,1], index: 3, kind: input, shape index: {}]   ;;  %s1505_s4 = inlined_call_operand.hbm [shape: f32[2,4,256], index: 4, kind: output, shape index: {}]  }
   0x1   :  { %11 = vsyncpa [#allocation3 + $0x1], 0  ;;  %s1219_s15 = smov 0   ;;  %s1221_s16 = smov 0  }
   0x2   :  { %s1223_s17 = smov 0   ;;  %s1225_s18 = smov 0  }
   0x3 LB: > { %s1240_s19 = sadd.s32 4294967295, %s1181_s18   ;;  %s957_s20 = sadd.s32 4294967294, %s1181_s18   ;;  %s1181_s18 = sphi %s1225_s18, %s1521_s18   ;;  %s1177_s17 = sphi %s1223_s17, %s1520_s17   ;;  %s1173_s16 = sphi %s1221_s16, %s1519_s16   ;;  %s1169_s15 = sphi %s1219_s15, %s1518_s15  }
   0x4   : > { %s1244_s21 = sadd.s32 1, %s1181_s18   ;;  %s113_s22 = sadd.s32 1, %s1177_s17 }
   0x5   : > { %s110_s23 = ssub.s32 %s1181_s18, %s1244_s21  ;;  %p123_p0 = scmp.ne.s32.totalorder %s1177_s17, %s1173_s16 }
   0x6   : > { %p111_p1 = scmp.eq.s32.totalorder %s110_s23, 0  ;;  %p124_p2 = scmp.eq.s32.totalorder %s1240_s19, 1 }
   0x7   : > { %p129_p3 = scmp.ne.s32.totalorder %s1173_s16, %s1169_s15  ;;  %p130_p4 = scmp.eq.s32.totalorder %s957_s20, 1 }
   0x8   : > { %s1255_s24 = scalar_select %p111_p1, %s1177_s17, %s113_s22  }
   0x9   : > { %p1257_p5 = por %p124_p2, %p123_p0  ;;  %p1261_p6 = por %p130_p4, %p129_p3 }
   0xa   : > { %p960_p7 = scmp.ge.s32.totalorder %s1181_s18, 1  ;;  %p165_p8 = scmp.lt.s32.totalorder %s1181_s18, 3 }
   0xc   : > { %p166_p9 = pnand %p960_p7, %p165_p8 }
   0xd   : > { %p191_p10 = scmp.lt.s32.totalorder (!%p166_p9), %s1240_s19, 1  ;;  %v1183_v0 = vmov (!%p166_p9), 0   ;;  %vm253_vm0 = vcmask (!%p166_p9), 1040384   ;;  %s1184_s6 = smov (!%p166_p9), 16   ;;  %vm249_vm1 = vcmask (!%p166_p9), 15360   ;;  %v197_v12 = vlaneseq (!%p166_p9) }
   0xe   : > { %169 = sbr.rel (%p166_p9) target bundleno = 432 (0x1b0), region = 36  ;;  %536 = vmatprep.mubr.bf16.mxu0 (!%p166_p9), %v1183_v0  ;;  %292 = vmatprep.mubr.bf16.mxu1 (!%p166_p9), %v1183_v0  ;;  %s1185_s7 = smov (!%p166_p9), 17   ;;  %v975_v7 = vld [vmem:[%s1502_s1 + $0x4] sm:$0x1] (!%p166_p9)  ;;  %v851_v8 = vld [vmem:[%s1503_s2 + $0x2] sm:$0x3] (!%p166_p9) }
   0xf   : > { %1116 = vset.pattern.permute.xlu0 (!%p166_p9), %v1183_v0  ;;  %1117 = vset.pattern.permute.xlu1 (!%p166_p9), %v1183_v0  ;;  %s1186_s10 = smov (!%p166_p9), 127   ;;  %s1187_s11 = smov (!%p166_p9), 113   ;;  %v827_v9 = vld [vmem:[%s1503_s2] sm:$0x3] (!%p166_p9)  ;;  %v866_v11 = vld [vmem:[%s1504_s3 + $0x2] sm:$0x3] (!%p166_p9) }
  0x10   : > { %s1188_s12 = smov (!%p166_p9), 15   ;;  %s1189_s13 = smov (!%p166_p9), 112   ;;  %v835_v10 = vld [vmem:[%s1504_s3] sm:$0x3] (!%p166_p9)  ;;  %v1299_v13 = vand.u32 (!%p166_p9), 127, %v197_v12 }
  0x11   : > { %s1190_s14 = smov (!%p166_p9), 1   ;;  %s1191_s20 = smov (!%p166_p9), 111   ;;  %v964_v49 = vld [vmem:[%s1502_s1 + $0x1] sm:$0x1] (!%p166_p9)  ;;  %v972_v26 = vld [vmem:[%s1502_s1 + $0x3] sm:$0x1] (!%p166_p9) }
  0x12   : > { %v1302_v14 = vadd.s32 (!%p166_p9), 128, %v1299_v13  ;;  %v200_v15 = vand.u32 (!%p166_p9), 15, %v1299_v13  ;;  %vm551_vm3 = vcmp.lt.s32.totalorder (!%p166_p9), %v1299_v13, 127  ;;  %vm236_vm4 = vcmp.lt.s32.totalorder (!%p166_p9), %v1299_v13, 16  ;;  %s188_s8 = sand.u32 (!%p166_p9), 1, %s1173_s16  }
  0x13   : > { %vm202_vm5 = vcmp.ge.s32.totalorder (!%p166_p9), %v1299_v13, 16  ;;  %vm218_vm7 = vcmp.lt.s32.totalorder (!%p166_p9), %v1299_v13, 17  ;;  %vm620_vm12 = vcmp.lt.s32.totalorder (!%p166_p9), %v1299_v13, 113  ;;  %vm355_vm14 = vcmp.lt.s32.totalorder (!%p166_p9), %v1299_v13, 15  ;;  %s961_s9 = sshll.u32 (!%p166_p9), %s188_s8, 3 }
  0x14   : > { %v201_v16 = vand.u32 (!%p166_p9), 15, %v1302_v14  ;;  %vm1306_vm2 = vcmp.ge.s32.totalorder (!%p166_p9), %v200_v15, 1  ;;  %vm1326_vm10 = vcmp.lt.s32.totalorder (!%p166_p9), %v200_v15, 15  ;;  %vm205_vm11 = vcmp.lt.s32.totalorder (!%p166_p9), %v1302_v14, 240  ;;  %v981_v14 = vld [vmem:[%s1502_s1 + $0x6] sm:$0x1] (!%p166_p9) }
  0x15   : > { %s192_s27 = scalar_select %p191_p10, %s1240_s19, 1  ;;  %vm221_vm8 = vmand %vm202_vm5, %vm1306_vm2  ;;  %vm691_vm15 = vcmp.lt.s32.totalorder %v1299_v13, 112 }
  0x16   : > { %vm1313_vm6 = vcmp.ge.s32.totalorder %v201_v16, 1  ;;  %vm1322_vm9 = vcmp.lt.s32.totalorder %v201_v16, 15 }
  0x17   : > { %s995_s28 = sshll.u32 %s192_s27, 3  ;;  %vm1341_vm13 = vmand %vm205_vm11, %vm1313_vm6 }
  0x18   : > { %s1276_s5 = scalar_lea.vmem %s1501_s0, %s995_s28 }
  0x19   : > { %v210_v1 = vld [vmem:[%s1276_s5] sm:$0x33] }
  0x1a   : > { %v212_v2 = vcombine.high %v210_v1, %v210_v1  ;;  %v493_v3 = vpack.c.bf16 %v210_v1, %v210_v1 }
  0x1c   : > { %v1076_v4 = vpack.i.bf16 %v212_v2, %v210_v1  ;;  %v494_v5 = vpack.c.bf16 %v212_v2, %v212_v2  ;;  %v499_v6 = vsel %vm253_vm0, %v493_v3, 0 }
  0x1e   : > { %1077 = vrot.lane.b32.xlu0 %v1076_v4, %s1184_s6  ;;  %1087 = vrot.lane.b32.xlu1 %v1076_v4, %s1185_s7 }
  0x1f   : > { %976 = vmatprep.subr.msk.bf16.mxu0 %vm253_vm0, %v494_v5 }
  0x20   : > { %505 = vmatpush1.bf16.msra.mxu0 %v499_v6 }
  0x22   : > { %1082 = vrot.lane.b32.xlu0 %v1076_v4, %s1186_s10  ;;  %1092 = vrot.lane.b32.xlu1 %v1076_v4, %s1187_s11  ;;  %s190_s10 = scalar_lea.vmem [#allocation2], %s961_s9 }
  0x23   : > { %977 = vmatmul.mubr.msk.bf16.vlgmr.msra.gmra.mrb[0].mxu0 %vm249_vm1, %v975_v7  ;;  %s898_s11 = sshll.u32 %s190_s10, 4  ;;  %s1461_s11 = int_to_ptr.vmem [resolvable:$true] %s898_s11 }
  0x24   : > { %605 = vmatprep.mubr.bf16.mxu0 %v1183_v0  ;;  %s1119_s22 = scalar_lea.vmem %s1461_s11, 128 }
  0x25   : > { %p1120_p11 = scmp.ne.s32.totalorder %s1461_s11, %s1119_s22 }
  0x26   : > { %1097 = vrot.lane.b32.xlu0 %v1076_v4, %s1188_s12  ;;  %1102 = vrot.lane.b32.xlu1 %v1076_v4, %s1189_s13 }
  0x27   : > { %p1121_p12 = pnand %p1120_p11, %p1257_p5 }
  0x29   : > { %p1122_p13 = pneg %p1121_p12 }
  0x2a   : > { %1107 = vrot.lane.b32.xlu0 %v1076_v4, %s1190_s14  ;;  %1112 = vrot.lane.b32.xlu1 %v1076_v4, %s1191_s20  ;;  %v978_v4 = vld [vmem:[%s1502_s1 + $0x5] sm:$0x1]  ;;  %s884_s20 = scalar_lea.sflag [#allocation3], %s188_s8 }
  0x2e   : > { %854 = vperm.xlu0 %1116, %v851_v8   ;;  %830 = vperm.xlu1 %1117, %v827_v9  }
  0x32   : > { %838 = vperm.xlu0 %1116, %v835_v10   ;;  %869 = vperm.xlu1 %1117, %v866_v11  }
  0x90   : > { %v1078_v18 = vpop.permute.xlu0 %1077  ;;  %v1088_v20 = vpop.permute.xlu1 %1087 }
  0x91   : > { %v1080_v21 = vunpack.i.h.bf16 %v1078_v18  ;;  %v1079_v22 = vunpack.i.l.bf16 %v1078_v18  ;;  %v1090_v23 = vunpack.i.h.bf16 %v1088_v20  ;;  %v1089_v24 = vunpack.i.l.bf16 %v1088_v20 }
  0x93   : > { %v237_v27 = vsel %vm236_vm4, %v1079_v22, %v1080_v21  ;;  %v238_v28 = vsel %vm236_vm4, %v1080_v21, %v1079_v22  ;;  %v219_v29 = vsel %vm218_vm7, %v1089_v24, %v1090_v23  ;;  %v220_v30 = vsel %vm218_vm7, %v1090_v23, %v1089_v24  ;;  %vm764_vm7 = vmand %vm205_vm11, %vm1322_vm9 }
  0x94   : > { %v1083_v31 = vpop.permute.xlu0 %1082  ;;  %v248_v32 = vpack.c.bf16 %v237_v27, %v237_v27  ;;  %v243_v33 = vsel %vm202_vm5, %v238_v28, 0.0  ;;  %v228_v34 = vsel %vm1313_vm6, %v219_v29, 0.0  ;;  %v1093_v35 = vpop.permute.xlu1 %1092  ;;  %v227_v36 = vsel %vm221_vm8, %v220_v30, 0.0 }
  0x95   : > { %v1085_v37 = vunpack.i.h.bf16 %v1083_v31  ;;  %v1084_v38 = vunpack.i.l.bf16 %v1083_v31  ;;  %v247_v39 = vpack.c.bf16 %v243_v33, %v243_v33  ;;  %v1095_v40 = vunpack.i.h.bf16 %v1093_v35 }
  0x96   : > { %965 = vmatprep.subr.msk.bf16.mxu1 %vm253_vm0, %v248_v32  ;;  %v1094_v42 = vunpack.i.l.bf16 %v1093_v35  ;;  %v231_v43 = vpack.c.bf16 %v228_v34, %v228_v34  ;;  %v230_v44 = vpack.c.bf16 %v227_v36, %v227_v36  ;;  %vm426_vm4 = vcmp.lt.s32.totalorder %v1299_v13, 1  ;;  %v229_v32 = vld [vmem:[%s1502_s1] sm:$0x1] }
  0x97   : > { %v552_v45 = vsel %vm551_vm3, %v1084_v38, %v1085_v37  ;;  %v553_v46 = vsel %vm551_vm3, %v1085_v37, %v1084_v38  ;;  %v255_v47 = vsel %vm253_vm0, %v247_v39, 0  ;;  %vm358_vm3 = vmand %vm202_vm5, %vm1326_vm10  ;;  %vm760_vm5 = vcmp.lt.s32.totalorder %v1299_v13, 111  ;;  %v984_v13 = vld [vmem:[%s1502_s1 + $0x7] sm:$0x1] }
  0x98   : > { %v559_v48 = vsel %vm1322_vm9, %v553_v46, 0.0  ;;  %261 = vmatpush1.bf16.msra.mxu1 %v255_v47  ;;  %v558_v50 = vsel %vm1326_vm10, %v552_v45, 0.0  ;;  %v621_v51 = vsel %vm620_vm12, %v1094_v42, %v1095_v40  ;;  %v622_v52 = vsel %vm620_vm12, %v1095_v40, %v1094_v42  ;;  %v1098_v53 = vpop.permute.xlu0 %1097  ;;  %v1103_v54 = vpop.permute.xlu1 %1102  ;;  %v969_v42 = vld [vmem:[%s1502_s1 + $0x2] sm:$0x1]  ;;  %v987_v45 = vld [vmem:[%s1502_s1 + $0x8] sm:$0x1] }
  0x99   : > { %v563_v55 = vpack.c.bf16 %v559_v48, %v559_v48  ;;  %v562_v56 = vpack.c.bf16 %v558_v50, %v558_v50  ;;  %v630_v57 = vsel %vm1341_vm13, %v622_v52, 0.0  ;;  %967 = vmatprep.subr.msk.bf16.mxu1 %vm253_vm0, %v231_v43  ;;  %v305_v58 = vsel %vm253_vm0, %v230_v44, 0 }
  0x9a   : > { %v634_v59 = vpack.c.bf16 %v630_v57, %v630_v57  ;;  %v1100_v60 = vunpack.i.h.bf16 %v1098_v53  ;;  %v1099_v61 = vunpack.i.l.bf16 %v1098_v53  ;;  %v629_v62 = vsel %vm1306_vm2, %v621_v51, 0.0  ;;  %v850_v53 = vld [vmem:[%s1276_s5] sm:$0xcc]  ;;  %s996_s5 = sshll.u32 %s1240_s19, 7  ;;  %s1193_s19 = smov [#allocation2]  }
  0x9b   : > { %966 = vmatmul.mubr.msk.bf16.vlgmr.msra.gmra.mrb[0].mxu1 %vm249_vm1, %v964_v49  ;;  %979 = vmatprep.subr.msk.bf16.mxu0 %vm253_vm0, %v563_v55  ;;  %v568_v63 = vsel %vm253_vm0, %v562_v56, 0  ;;  %v633_v1 = vpack.c.bf16 %v629_v62, %v629_v62  ;;  %v1105_v2 = vunpack.i.h.bf16 %v1103_v54  ;;  %v1104_v3 = vunpack.i.l.bf16 %v1103_v54  ;;  %s1459_s14 = scalar_lea.hbm %s1505_s4, %s996_s5  ;;  %s1123_s23 = sshll.u32 %s1193_s19, 4  ;;  %s1124_s23 = int_to_ptr.vmem [resolvable:$false] %s1123_s23 }
  0x9c   : > { %574 = vmatpush1.bf16.msra.mxu0 %v568_v63  ;;  %311 = vmatpush1.bf16.msra.mxu1 %v305_v58  ;;  %v356_v5 = vsel %vm355_vm14, %v1099_v61, %v1100_v60  ;;  %v357_v6 = vsel %vm355_vm14, %v1100_v60, %v1099_v61  ;;  %v1108_v7 = vpop.permute.xlu0 %1107  ;;  %v1113_v11 = vpop.permute.xlu1 %1112  ;;  %v1192_v46 = vmov 839922192   ;;  %v860_v49 = vshrl.u32 %v197_v12, 7  ;;  %s1125_s27 = scalar_lea.vmem %s1124_s23, 256  ;;  %p1126_p0 = scmp.lt.s32.totalorder %s1461_s11, %s1124_s23 }
  0x9d   : > { %342 = vmatprep.mubr.bf16.mxu1 %v1183_v0  ;;  %982 = vmatprep.subr.msk.bf16.mxu0 %vm253_vm0, %v634_v59  ;;  %v365_v8 = vsel %vm1322_vm9, %v356_v5, 0.0  ;;  %v639_v9 = vsel %vm253_vm0, %v633_v1, 0  ;;  %v693_v10 = vsel %vm691_vm15, %v1105_v2, %v1104_v3  ;;  %v364_v18 = vsel %vm358_vm3, %v357_v6, 0.0  ;;  %p1127_p1 = scmp.lt.s32.totalorder %s1125_s27, %s1119_s22 }
  0x9e   : > { %v699_v15 = vsel %vm205_vm11, %v693_v10, 0.0  ;;  %v369_v16 = vpack.c.bf16 %v365_v8, %v365_v8  ;;  %v1110_v21 = vunpack.i.h.bf16 %v1108_v7  ;;  %v1109_v22 = vunpack.i.l.bf16 %v1108_v7 }
  0x9f   : > { %980 = vmatmul.mubr.msk.bf16.vlgmr.msra.gmra.mrb[0].mxu0 %vm249_vm1, %v978_v4  ;;  %v703_v20 = vpack.c.bf16 %v699_v15, %v699_v15  ;;  %v1115_v23 = vunpack.i.h.bf16 %v1113_v11  ;;  %v1114_v24 = vunpack.i.l.bf16 %v1113_v11  ;;  %v368_v27 = vpack.c.bf16 %v364_v18, %v364_v18  ;;  %p1128_p2 = por %p1127_p1, %p1126_p0 }
  0xa0   : > { %645 = vmatpush1.bf16.msra.mxu0 %v639_v9  ;;  %676 = vmatprep.mubr.bf16.mxu0 %v1183_v0  ;;  %v427_v28 = vsel %vm426_vm4, %v1109_v22, %v1110_v21  ;;  %v692_v29 = vsel %vm691_vm15, %v1104_v3, %v1105_v2  ;;  %v428_v19 = vsel %vm426_vm4, %v1110_v21, %v1109_v22  ;;  %v857_v47 = vunpack.c.l.s4 %v1192_v46 }
  0xa1   : > { %970 = vmatprep.subr.msk.bf16.mxu1 %vm253_vm0, %v369_v16  ;;  %985 = vmatprep.subr.msk.bf16.mxu0 %vm253_vm0, %v703_v20  ;;  %v434_v30 = vsel %vm1313_vm6, %v427_v28, 0.0  ;;  %v762_v31 = vsel %vm760_vm5, %v1115_v23, %v1114_v24  ;;  %v374_v33 = vsel %vm253_vm0, %v368_v27, 0  ;;  %v702_v34 = vpack.c.bf16 %v692_v29, %v692_v29  ;;  %p1129_p3 = pnand %p1128_p2, %p1122_p13 }
  0xa2   : > { %v438_v35 = vpack.c.bf16 %v434_v30, %v434_v30  ;;  %v770_v36 = vsel %vm764_vm7, %v762_v31, 0.0  ;;  %v433_v38 = vsel %vm1306_vm2, %v428_v19, 0.0  ;;  %v761_v39 = vsel %vm760_vm5, %v1114_v24, %v1115_v23 }
  0xa3   : > { %v708_v25 = vsel %vm253_vm0, %v702_v34, 0  ;;  %v774_v37 = vpack.c.bf16 %v770_v36, %v770_v36  ;;  %v437_v40 = vpack.c.bf16 %v433_v38, %v433_v38  ;;  %v769_v41 = vsel %vm1326_vm10, %v761_v39, 0.0 }
  0xa4   : > { %v773_v43 = vpack.c.bf16 %v769_v41, %v769_v41  ;;  %v858_v48 = vunpack.c.0.s8 %v857_v47 }
  0xa5   : > { %v443_v17 = vsel %vm253_vm0, %v437_v40, 0 }
  0xa6   : > { %v779_v44 = vsel %vm253_vm0, %v773_v43, 0 }
  0xa7   : > { %968 = vmatmul.mubr.msk.bf16.vlgmr.msra.gmra.mrb[0].mxu1 %vm249_vm1, %v229_v32 }
  0xa8   : > { %380 = vmatpush1.bf16.msra.mxu1 %v374_v33  ;;  %411 = vmatprep.mubr.bf16.mxu1 %v1183_v0 }
  0xa9   : > { %973 = vmatprep.subr.msk.bf16.mxu1 %vm253_vm0, %v438_v35 }
  0xab   : > { %983 = vmatmul.mubr.msk.bf16.vlgmr.msra.gmra.mrb[0].mxu0 %vm249_vm1, %v981_v14 }
  0xac   : > { %714 = vmatpush1.bf16.msra.mxu0 %v708_v25  ;;  %745 = vmatprep.mubr.bf16.mxu0 %v1183_v0 }
  0xad   : > { %988 = vmatprep.subr.msk.bf16.mxu0 %vm253_vm0, %v774_v37  ;;  %v831_v50 = vpop.permute.xlu1 %830  ;;  %v855_v51 = vpop.permute.xlu0 %854 }
  0xb1   : > { %v870_v54 = vpop.permute.xlu1 %869  ;;  %v839_v9 = vpop.permute.xlu0 %838 }
  0xb3   : > { %971 = vmatmul.mubr.msk.bf16.vlgmr.msra.gmra.mrb[0].mxu1 %vm249_vm1, %v969_v42 }
  0xb4   : > { %449 = vmatpush1.bf16.msra.mxu1 %v443_v17  ;;  %480 = vmatprep.mubr.bf16.mxu1 %v1183_v0 }
  0xb7   : > { %986 = vmatmul.mubr.msk.bf16.vlgmr.msra.gmra.mrb[0].mxu0 %vm249_vm1, %v984_v13 }
  0xb8   : > { %785 = vmatpush1.bf16.msra.mxu0 %v779_v44  ;;  %816 = vmatprep.mubr.bf16.mxu0 %v1183_v0  ;;  %v861_v0 = vsub.s32 %v858_v48, %v860_v49 }
  0xba   : > { %v862_v52 = vrot.slane %v855_v51, %v861_v0  ;;  %v877_v56 = vrot.slane %v870_v54, %v861_v0 }
  0xbc   : > { %v863_v55 = vrot.slane %v862_v52, 6  ;;  %v878_v58 = vrot.slane %v877_v56, 6 }
  0xbe   : > { %v865_v57 = vmul.f32 %v863_v55, %v850_v53 }
  0xbf   : > { %974 = vmatmul.mubr.msk.bf16.vlgmr.msra.gmra.mrb[0].mxu1 %vm249_vm1, %v972_v26 }
  0xc0   : > { %v880_v59 = vadd.f32 %v878_v58, %v865_v57 }
  0xc2   : > { %v881_v60 = vmax.f32 %v880_v59, 0.0 }
  0xc3   : > { %989 = vmatmul.mubr.msk.bf16.vlgmr.msra.gmra.mrb[0].mxu0 %vm249_vm1, %v987_v45 }
  0xc4   : > { %882 = vst [vmem:[%s190_s10] sm:$0xcc] %v881_v60 }
 0x192   : > { %v482_v61 = vpop.f32.mrb[0].mxu1 }
 0x193   : > { %v484_v62 = vpop.f32.mrb[1].mxu1 }
 0x194   : > { %v486_v12 = vpop.f32.mrb[2].mxu1 }
 0x195   : > { %v487_v63 = vpop.f32.mrb[3].mxu1 }
 0x196   : > { %v818_v1 = vpop.f32.mrb[0].mxu0 }
 0x197   : > { %v997_v2 = vadd.f32 %v818_v1, %v482_v61  ;;  %v820_v3 = vpop.f32.mrb[1].mxu0 }
 0x198   : > { %v998_v4 = vadd.f32 %v820_v3, %v484_v62  ;;  %v822_v5 = vpop.f32.mrb[2].mxu0 }
 0x199   : > { %v833_v6 = vmul.f32 %v997_v2, %v831_v50  ;;  %v823_v7 = vpop.f32.mrb[3].mxu0 }
 0x19a   : > { %v834_v8 = vmul.f32 %v998_v4, %v831_v50 }
 0x19b   : > { %v841_v10 = vadd.f32 %v839_v9, %v833_v6 }
 0x19c   : > { %v842_v11 = vadd.f32 %v839_v9, %v834_v8 }
 0x19d   : > { %v843_v15 = vmax.f32 %v841_v10, 0.0 }
 0x19e   : > { %v844_v16 = vmax.f32 %v842_v11, 0.0 }
 0x1a0   : > { %v847_v18 = vcombine.low %v843_v15, %v844_v16 }
 0x1a2   : > { %849 = vst [vmem:[%s190_s10] sm:$0x33] %v847_v18 }
 0x1a3   : > { %1132 = shalt.err (!%p1129_p3)
}
 0x1a4   : > { %s1133_s28 = scalar_lea.hbm %s1459_s14, 128  ;;  %s1137_s6 = scalar_lea.hbm %s1505_s4, 256 }
 0x1a5   : > { %p1134_p4 = scmp.ne.s32.totalorder %s1459_s14, %s1133_s28  ;;  %p1138_p9 = scmp.lt.u32.totalorder %s1459_s14, %s1505_s4 }
 0x1a6   : > { %p1139_p10 = scmp.lt.u32.totalorder %s1137_s6, %s1133_s28  ;;  %p1141_p12 = scmp.lt.u32.totalorder %s1133_s28, %s1459_s14 }
 0x1a7   : > { %p1135_p7 = pnand %p1134_p4, %p1257_p5 }
 0x1a8   : > { %p1140_p11 = por %p1139_p10, %p1138_p9 }
 0x1a9   : > { %p1136_p8 = pneg %p1135_p7 }
 0x1aa   : > { %p1142_p13 = por %p1141_p12, %p1140_p11 }
 0x1ac   : > { %p1143_p0 = pnand %p1142_p13, %p1136_p8 }
 0x1ae   : > { %1146 = shalt.err (!%p1143_p0)
}
 0x1af   : > { %1027 = dma.vmem_to_hbm [thread:$0]  (%p1257_p5), %s1461_s11, 128, %s1459_s14, %s884_s20  }
 0x1b0 PF: > { %p1033_p1 = scmp.ge.s32.totalorder %s1181_s18, 2  ;;  %s910_s9 = sand.u32 1, %s1169_s15  }
 0x1b1   : > { %s911_s10 = scalar_lea.sflag [#allocation3], %s910_s9 }
 0x1b2   : > { %p1030_p2 = pnand %p1033_p1, %p1261_p6 }
 0x1b4   : > { %1164 = dma.done.wait (!%p1030_p2), %s911_s10, 128  }
 0x1b5   : > { %1166 = vsyncadd (!%p1030_p2), %s911_s10, 4294967168  ;;  %p14_p3 = scmp.ge.s32.totalorder %s1244_s21, 4   ;;  %s1518_s15 = smov %s1173_s16 }
 0x1b6   : > { %s1519_s16 = smov %s1177_s17  ;;  %s1520_s17 = smov %s1255_s24 }
 0x1b7   : > { %s1521_s18 = smov %s1244_s21  ;;  %16 = sbr.rel (!%p14_p3) target bundleno = 3 (0x3), region = 79 }
 0x1be   :  { %916 = vsyncpa [#allocation3], 1 }
 0x1bf   :  { %918 = vsyncpa [#allocation3 + $0x1], 1 }

</bundles_post_ra>
